<compile_context>
chip_gen: v7x
topology: tpu7x:2x2x1
jax: 0.10.0
libtpu: 0.0.40
codegen_flags: <defaults>
</compile_context>

<pallas_src>
import functools

import jax
import jax.numpy as jnp
from jax.experimental import pallas as pl
from jax.experimental.pallas import tpu as pltpu


def _round_up(x, m):
    return (x + m - 1) // m * m


def fused_gcn_kernel(x_hbm, a_in, w_ref, b_ref, o_ref, h_buf, xw_buf, *rest,
                     n_layers, row_tile, n_valid, mask_rows, a_resident):
    l = pl.program_id(0)            # layer index (outer, sequential)
    r = pl.program_id(1)            # node-row tile index
    last = n_layers - 1
    a_vmem = rest[0] if a_resident else None

    # One-time DMAs: input features straight into the activation scratch
    # (no seed vector-copy, no duplicated X block) and, if it fits, the whole
    # A_hat into VMEM so it is read from HBM exactly once for all 3 layers.
    @pl.when(jnp.logical_and(l == 0, r == 0))
    def _():
        pltpu.sync_copy(x_hbm, h_buf)
        if a_resident:
            pltpu.sync_copy(a_in, a_vmem)

    # Per layer (r == 0): feature transform H @ W_l, computed once over ALL
    # nodes, kept resident in VMEM and reused by every aggregation row tile.
    @pl.when(r == 0)
    def _():
        xw = jnp.dot(h_buf[...], w_ref[0], preferred_element_type=jnp.float32)
        xw_buf[...] = xw.astype(xw_buf.dtype)

    # Aggregation for this row tile: A_hat[rows, :] @ (H W_l) + b_l.
    a_rows = a_vmem[...] if a_resident else a_in[...]
    acc = jnp.dot(a_rows, xw_buf[...], preferred_element_type=jnp.float32)
    acc = acc + b_ref[0]                                    # f32 epilogue

    @pl.when(l < last)                                      # hidden layers
    def _():
        h = jnp.maximum(acc, 0.0)                           # ReLU
        if mask_rows:                                       # keep padded rows 0
            rows = jax.lax.broadcasted_iota(jnp.int32, (row_tile, 1), 0)
            h = jnp.where(rows + r * row_tile < n_valid, h, 0.0)
        h = h.astype(h_buf.dtype)
        if a_resident:
            h_buf[...] = h
        else:
            row0 = pl.multiple_of(r * row_tile, row_tile)
            h_buf[pl.ds(row0, row_tile), :] = h

    @pl.when(l == last)                  # only the final layer's result is kept
    def _():
        o_ref[...] = acc.astype(o_ref.dtype)


def gcn_forward(a_norm, x, params, *, row_tile=None):
    """out = conv3(A, relu(conv2(A, relu(conv1(A, x)))))  with A = A_hat."""
    compute_dtype = jnp.bfloat16
    bf, f32b = 2, 4
    n_layers = 3

    n = a_norm.shape[0]
    in_feats = x.shape[1]
    hid_feats = params["w1"].shape[1]
    out_feats = params["w3"].shape[1]
    f_pad = _round_up(max(in_feats, hid_feats, out_feats), 128)   # lane-dense

    # VMEM budget per TensorCore (fallback: 64 MiB v7x floor); keep headroom
    # for Mosaic internal scratch.
    vmem_cap = 64 * 2**20
    try:
        vmem_cap = int(pltpu.get_tpu_info().vmem_capacity_bytes)
    except Exception:
        pass
    budget = int(vmem_cap * 0.7)

    # --- Mode selection: A_hat resident in VMEM vs. streamed row tiles. ---
    n_res = _round_up(max(n, 16), 16)        # only the bf16 sublane granule
    resident_need = (n_res * n_res * bf                  # A_hat (single copy)
                     + 2 * n_res * f_pad * bf            # h_buf + xw_buf
                     + 2 * f_pad * f_pad * bf            # W blocks (2 bufs)
                     + 2 * f_pad * f32b                  # bias blocks (2 bufs)
                     + 2 * n_res * f_pad * f32b)         # out block (2 bufs)
    a_resident = resident_need + (4 << 20) <= budget

    if a_resident:
        n_pad, tile, n_tiles = n_res, n_res, 1
        out_dtype = jnp.float32
        a_spec = pl.BlockSpec(memory_space=pl.ANY)        # DMA'd once in-kernel
        out_spec = pl.BlockSpec((n_pad, f_pad), lambda l, r: (0, 0))  # 1x writeback
        scratch = [pltpu.VMEM((n_pad, f_pad), compute_dtype),   # h_buf
                   pltpu.VMEM((n_pad, f_pad), compute_dtype),   # xw_buf
                   pltpu.VMEM((n_pad, n_pad), compute_dtype)]   # resident A_hat
        vmem_need = resident_need
    else:
        # Streamed fallback for graphs whose A_hat does not fit VMEM.
        # 256-row tiles fill the 256-wide v6e/v7x MXU; pass row_tile=128 on v5e.
        tile = 256 if row_tile is None else row_tile
        n_pad = _round_up(n, tile)
        n_tiles = n_pad // tile
        out_dtype = compute_dtype                         # halve writeback
        a_spec = pl.BlockSpec((tile, n_pad), lambda l, r: (r, 0),
                              pipeline_mode=pl.Buffered(3))
        out_spec = pl.BlockSpec((tile, f_pad), lambda l, r: (r, 0))
        scratch = [pltpu.VMEM((n_pad, f_pad), compute_dtype),
                   pltpu.VMEM((n_pad, f_pad), compute_dtype)]
        vmem_need = (3 * tile * n_pad * bf                # A tiles, Buffered(3)
                     + 2 * n_pad * f_pad * bf             # h_buf + xw_buf
                     + 2 * f_pad * f_pad * bf             # W blocks
                     + 2 * f_pad * f32b                   # bias blocks
                     + 2 * tile * f_pad * bf)             # out tiles (bf16)
    vmem_limit = int(min(budget, max(vmem_need + (4 << 20), 16 << 20)))

    def pad2(arr, rows, cols):
        return jnp.pad(arr, ((0, rows - arr.shape[0]), (0, cols - arr.shape[1])))

    a_p = pad2(a_norm.astype(jnp.float32), n_pad, n_pad).astype(compute_dtype)
    x_p = pad2(x.astype(jnp.float32), n_pad, f_pad).astype(compute_dtype)
    w_all = jnp.stack([pad2(params["w1"], f_pad, f_pad),
                       pad2(params["w2"], f_pad, f_pad),
                       pad2(params["w3"], f_pad, f_pad)]).astype(compute_dtype)
    b_all = jnp.stack([pad2(params["b1"], 1, f_pad),
                       pad2(params["b2"], 1, f_pad),
                       pad2(params["b3"], 1, f_pad)]).astype(jnp.float32)

    flops = n_layers * (2 * n_pad * f_pad * f_pad + 2 * n_pad * n_pad * f_pad)
    a_bytes = n_pad * n_pad * bf
    bytes_accessed = (a_bytes * (1 if a_resident else n_layers)
                      + x_p.size * bf + w_all.size * bf + b_all.size * f32b
                      + (n_pad * f_pad * f32b if a_resident
                         else n_layers * n_pad * f_pad * bf))

    kernel = functools.partial(
        fused_gcn_kernel, n_layers=n_layers, row_tile=tile,
        n_valid=n, mask_rows=(n != n_pad), a_resident=a_resident)

    out_padded = pl.pallas_call(
        kernel,
        out_shape=jax.ShapeDtypeStruct((n_pad, f_pad), out_dtype),
        grid=(n_layers, n_tiles),
        in_specs=[
            pl.BlockSpec(memory_space=pl.ANY),                        # X (DMA once)
            a_spec,                                                   # A_hat
            pl.BlockSpec((1, f_pad, f_pad), lambda l, r: (l, 0, 0)),  # W_l
            pl.BlockSpec((1, 1, f_pad), lambda l, r: (l, 0, 0)),      # b_l
        ],
        out_specs=out_spec,
        scratch_shapes=scratch,
        compiler_params=pltpu.CompilerParams(
            # Layer l+1 consumes all of layer l's activations and xw_buf is
            # shared across row tiles -> both axes stay sequential.
            dimension_semantics=("arbitrary", "arbitrary"),
            vmem_limit_bytes=vmem_limit),
        cost_estimate=pl.CostEstimate(
            flops=flops, transcendentals=0, bytes_accessed=bytes_accessed),
    )(x_p, a_p, w_all, b_all)

    return out_padded[:n, :out_feats].astype(jnp.float32)


def xavier_uniform(key, fan_in, fan_out):
    limit = jnp.sqrt(6.0 / (fan_in + fan_out))
    return jax.random.uniform(
        key, (fan_in, fan_out), dtype=jnp.float32, minval=-limit, maxval=limit)


def init_gcn_params(key, in_feats, hid_feats, out_feats):
    k1, k2, k3 = jax.random.split(key, 3)
    return {
        "w1": xavier_uniform(k1, in_feats, hid_feats),
        "b1": jnp.zeros((1, hid_feats), jnp.float32),
        "w2": xavier_uniform(k2, hid_feats, hid_feats),
        "b2": jnp.zeros((1, hid_feats), jnp.float32),
        "w3": xavier_uniform(k3, hid_feats, out_feats),
        "b3": jnp.zeros((1, out_feats), jnp.float32),
    }


def build_normalized_adjacency(key, n_nodes, p_edge=0.15):
    # Random undirected graph + self-loops, symmetric normalization
    # A_hat = D^{-1/2} (A + I) D^{-1/2}   (DGL GraphConv norm='both').
    a = jax.random.bernoulli(key, p_edge, (n_nodes, n_nodes)).astype(jnp.float32)
    a = jnp.maximum(a, a.T)
    a = jnp.maximum(a, jnp.eye(n_nodes, dtype=jnp.float32))
    deg = jnp.sum(a, axis=1)
    d_inv_sqrt = 1.0 / jnp.sqrt(jnp.maximum(deg, 1.0))
    return a * d_inv_sqrt[:, None] * d_inv_sqrt[None, :]


if __name__ == "__main__":
    key = jax.random.PRNGKey(0)
    k_graph, k_feat, k_param = jax.random.split(key, 3)

    N = 64
    IN_FEATS, HID_FEATS, OUT_FEATS = 16, 32, 8

    a_norm = build_normalized_adjacency(k_graph, N)
    x = jax.random.normal(k_feat, (N, IN_FEATS), dtype=jnp.float32)
    params = init_gcn_params(k_param, IN_FEATS, HID_FEATS, OUT_FEATS)

    out = jax.jit(gcn_forward)(a_norm, x, params)
    jax.block_until_ready(out)

    # Plain-JAX reference with matching bf16 MXU operands / f32 accumulation.
    def ref_layer(a16, h, w, b, relu):
        xw = jnp.dot(h.astype(jnp.bfloat16), w.astype(jnp.bfloat16),
                     preferred_element_type=jnp.float32).astype(jnp.bfloat16)
        y = jnp.dot(a16, xw, preferred_element_type=jnp.float32) + b
        return jnp.maximum(y, 0.0) if relu else y

    a16 = a_norm.astype(jnp.bfloat16)
    h_ref = ref_layer(a16, x, params["w1"], params["b1"], True)
    h_ref = ref_layer(a16, h_ref, params["w2"], params["b2"], True)
    h_ref = ref_layer(a16, h_ref, params["w3"], params["b3"], False)

    assert out.shape == (N, OUT_FEATS)
    assert jnp.allclose(out, h_ref, atol=1e-2, rtol=1e-2), float(
        jnp.max(jnp.abs(out - h_ref)))

    print("KERNEL_OK")
</pallas_src>

<mosaic_0001>
module attributes {stable_mosaic.version = 11 : i64} {
  func.func @fused_gcn_kernel(%arg0: i32, %arg1: i32, %arg2: memref<64x128xbf16, #tpu.memory_space<any>>, %arg3: memref<64x64xbf16, #tpu.memory_space<any>>, %arg4: memref<1x128x128xbf16, #tpu.memory_space<vmem>>, %arg5: memref<1x1x128xf32, #tpu.memory_space<vmem>>, %arg6: memref<64x128xf32, #tpu.memory_space<vmem>>, %arg7: memref<64x128xbf16, #tpu.memory_space<vmem>>, %arg8: memref<64x128xbf16, #tpu.memory_space<vmem>>, %arg9: memref<64x64xbf16, #tpu.memory_space<vmem>>) attributes {dimension_semantics = [#tpu.dimension_semantics<arbitrary>, #tpu.dimension_semantics<arbitrary>], iteration_bounds = array<i64: 3, 1>, scalar_prefetch = 0 : i64, scratch_operands = 3 : i64, tpu.core_type = #tpu.core_type<tc>, window_params = [{}, {}, {transform_indices = @transform_2, window_bounds = array<i64: 1, 128, 128>}, {transform_indices = @transform_3, window_bounds = array<i64: 1, 1, 128>}, {pipeline_mode = #tpu.pipeline_mode<synchronous>, transform_indices = @transform_4, window_bounds = array<i64: 64, 128>}]} {
    %c0_i32 = arith.constant 0 : i32
    %0 = arith.cmpi eq, %arg0, %c0_i32 : i32
    %c0_i32_0 = arith.constant 0 : i32
    %1 = arith.cmpi eq, %arg1, %c0_i32_0 : i32
    %2 = arith.andi %0, %1 : i1
    %3 = arith.extui %2 : i1 to i32
    %c0_i32_1 = arith.constant 0 : i32
    %4 = arith.cmpi ne, %3, %c0_i32_1 : i32
    scf.if %4 {
      "tpu.region"() ({
        %21 = tpu.sem_alloc : memref<!tpu.dma_semaphore, #tpu.memory_space<semaphore_mem>>
        tpu.enqueue_dma source(%arg2 : memref<64x128xbf16, #tpu.memory_space<any>>) target(%arg7 : memref<64x128xbf16, #tpu.memory_space<vmem>>) target_semaphore(%21 : memref<!tpu.dma_semaphore, #tpu.memory_space<semaphore_mem>>)
        tpu.wait_dma2 semaphore(%21 : memref<!tpu.dma_semaphore, #tpu.memory_space<semaphore_mem>>) src(%arg2 : memref<64x128xbf16, #tpu.memory_space<any>>) dst(%arg7 : memref<64x128xbf16, #tpu.memory_space<vmem>>)
        tpu.yield
      }) : () -> ()
      "tpu.region"() ({
        %21 = tpu.sem_alloc : memref<!tpu.dma_semaphore, #tpu.memory_space<semaphore_mem>>
        tpu.enqueue_dma source(%arg3 : memref<64x64xbf16, #tpu.memory_space<any>>) target(%arg9 : memref<64x64xbf16, #tpu.memory_space<vmem>>) target_semaphore(%21 : memref<!tpu.dma_semaphore, #tpu.memory_space<semaphore_mem>>)
        tpu.wait_dma2 semaphore(%21 : memref<!tpu.dma_semaphore, #tpu.memory_space<semaphore_mem>>) src(%arg3 : memref<64x64xbf16, #tpu.memory_space<any>>) dst(%arg9 : memref<64x64xbf16, #tpu.memory_space<vmem>>)
        tpu.yield
      }) : () -> ()
    } else {
    }
    %c0_i32_2 = arith.constant 0 : i32
    %5 = arith.cmpi eq, %arg1, %c0_i32_2 : i32
    %6 = arith.extui %5 : i1 to i32
    %c0_i32_3 = arith.constant 0 : i32
    %7 = arith.cmpi ne, %6, %c0_i32_3 : i32
    scf.if %7 {
      %c0_13 = arith.constant 0 : index
      %c0_14 = arith.constant 0 : index
      %21 = vector.load %arg7[%c0_13, %c0_14] : memref<64x128xbf16, #tpu.memory_space<vmem>>, vector<64x128xbf16>
      %c0_15 = arith.constant 0 : index
      %c0_16 = arith.constant 0 : index
      %c0_17 = arith.constant 0 : index
      %22 = vector.load %arg4[%c0_15, %c0_16, %c0_17] : memref<1x128x128xbf16, #tpu.memory_space<vmem>>, vector<1x128x128xbf16>
      %23 = vector.shape_cast %22 : vector<1x128x128xbf16> to vector<128x128xbf16>
      %cst_18 = arith.constant dense<0.000000e+00> : vector<64x128xf32>
      %24 = tpu.matmul %21, %23, %cst_18 {dimension_numbers = #tpu.dot_dimension_numbers<[1], [0], [0], [1], [0, 0, 1, 1], [], []>} : vector<64x128xbf16>, vector<128x128xbf16>, vector<64x128xf32> -> vector<64x128xf32>
      %25 = arith.truncf %24 : vector<64x128xf32> to vector<64x128xbf16>
      %c0_19 = arith.constant 0 : index
      %c0_20 = arith.constant 0 : index
      %26 = vector.load %arg8[%c0_19, %c0_20] : memref<64x128xbf16, #tpu.memory_space<vmem>>, vector<64x128xbf16>
      tpu.vector_store %arg8[%c0_19, %c0_20], %25 {strides = array<i32>} : memref<64x128xbf16, #tpu.memory_space<vmem>>, vector<64x128xbf16>,
    } else {
    }
    %c0 = arith.constant 0 : index
    %c0_4 = arith.constant 0 : index
    %8 = vector.load %arg9[%c0, %c0_4] : memref<64x64xbf16, #tpu.memory_space<vmem>>, vector<64x64xbf16>
    %c0_5 = arith.constant 0 : index
    %c0_6 = arith.constant 0 : index
    %9 = vector.load %arg8[%c0_5, %c0_6] : memref<64x128xbf16, #tpu.memory_space<vmem>>, vector<64x128xbf16>
    %cst = arith.constant dense<0.000000e+00> : vector<64x128xf32>
    %10 = tpu.matmul %8, %9, %cst {dimension_numbers = #tpu.dot_dimension_numbers<[1], [0], [0], [1], [0, 0, 1, 1], [], []>} : vector<64x64xbf16>, vector<64x128xbf16>, vector<64x128xf32> -> vector<64x128xf32>
    %c0_7 = arith.constant 0 : index
    %c0_8 = arith.constant 0 : index
    %c0_9 = arith.constant 0 : index
    %11 = vector.load %arg5[%c0_7, %c0_8, %c0_9] : memref<1x1x128xf32, #tpu.memory_space<vmem>>, vector<1x1x128xf32>
    %12 = vector.shape_cast %11 : vector<1x1x128xf32> to vector<1x128xf32>
    %13 = vector.broadcast %12 : vector<1x128xf32> to vector<64x128xf32>
    %14 = arith.addf %10, %13 : vector<64x128xf32>
    %c2_i32 = arith.constant 2 : i32
    %15 = arith.cmpi slt, %arg0, %c2_i32 : i32
    %16 = arith.extui %15 : i1 to i32
    %c0_i32_10 = arith.constant 0 : i32
    %17 = arith.cmpi ne, %16, %c0_i32_10 : i32
    scf.if %17 {
      %cst_13 = arith.constant 0.000000e+00 : f32
      %21 = vector.broadcast %cst_13 : f32 to vector<64x128xf32>
      %22 = arith.maximumf %14, %21 : vector<64x128xf32>
      %23 = arith.truncf %22 : vector<64x128xf32> to vector<64x128xbf16>
      %c0_14 = arith.constant 0 : index
      %c0_15 = arith.constant 0 : index
      %24 = vector.load %arg7[%c0_14, %c0_15] : memref<64x128xbf16, #tpu.memory_space<vmem>>, vector<64x128xbf16>
      tpu.vector_store %arg7[%c0_14, %c0_15], %23 {strides = array<i32>} : memref<64x128xbf16, #tpu.memory_space<vmem>>, vector<64x128xbf16>,
    } else {
    }
    %c2_i32_11 = arith.constant 2 : i32
    %18 = arith.cmpi eq, %arg0, %c2_i32_11 : i32
    %19 = arith.extui %18 : i1 to i32
    %c0_i32_12 = arith.constant 0 : i32
    %20 = arith.cmpi ne, %19, %c0_i32_12 : i32
    scf.if %20 {
      %c0_13 = arith.constant 0 : index
      %c0_14 = arith.constant 0 : index
      %21 = vector.load %arg6[%c0_13, %c0_14] : memref<64x128xf32, #tpu.memory_space<vmem>>, vector<64x128xf32>
      tpu.vector_store %arg6[%c0_13, %c0_14], %14 {strides = array<i32>} : memref<64x128xf32, #tpu.memory_space<vmem>>, vector<64x128xf32>,
    } else {
    }
    return
  }
  func.func @transform_2(%arg0: i32, %arg1: i32) -> (i32, i32, i32) {
    %c0_i32 = arith.constant 0 : i32
    %c0_i32_0 = arith.constant 0 : i32
    %c0_i32_1 = arith.constant 0 : i32
    return %arg0, %c0_i32, %c0_i32_0 : i32, i32, i32
  }
  func.func @transform_3(%arg0: i32, %arg1: i32) -> (i32, i32, i32) {
    %c0_i32 = arith.constant 0 : i32
    %c0_i32_0 = arith.constant 0 : i32
    %c0_i32_1 = arith.constant 0 : i32
    return %arg0, %c0_i32, %c0_i32_0 : i32, i32, i32
  }
  func.func @transform_4(%arg0: i32, %arg1: i32) -> (i32, i32) {
    %c0_i32 = arith.constant 0 : i32
    %c0_i32_0 = arith.constant 0 : i32
    %c0_i32_1 = arith.constant 0 : i32
    return %c0_i32, %c0_i32_0 : i32, i32
  }
}

</mosaic_0001>

<bundles_post_ra>
// kernel: gcn_forward.1
= control target key start
LH: loop header
LB: loop body
LE: loop exit
PB: predicated region body
PF: predicated region fallthrough
CT: control target
= control target key end

     0   :  { %s769_s15 = smov 0   ;;  %s771_s16 = smov 0   ;;  %s880_s0 = inlined_call_operand.vmem [shape: bf16[64,128], index: 0, kind: input, shape index: {}]   ;;  %s881_s1 = inlined_call_operand.vmem [shape: bf16[64,64], index: 1, kind: input, shape index: {}]   ;;  %s882_s2 = inlined_call_operand.vmem [shape: bf16[3,128,128], index: 2, kind: input, shape index: {}]   ;;  %s883_s3 = inlined_call_operand.vmem [shape: f32[3,1,128], index: 3, kind: input, shape index: {}]   ;;  %s884_s4 = inlined_call_operand.vmem [shape: f32[64,128], index: 4, kind: output, shape index: {}]  }
   0x1   :  { %s773_s17 = smov 0  }
   0x2 LB: > { %s26_s18 = sadd.s32 1, %s738_s16  ;;  %p601_p0 = scmp.ge.s32.totalorder %s742_s17, 1  ;;  %s742_s17 = sphi %s773_s17, %s14_s17   ;;  %s738_s16 = sphi %s771_s16, %s886_s16   ;;  %s734_s15 = sphi %s769_s15, %s885_s15  }
   0x3   : > { %p28_p1 = scmp.ge.s32.totalorder %s26_s18, 3  ;;  %p129_p2 = scmp.lt.s32.totalorder %s742_s17, 4 }
   0x5   : > { %s888_s18 = smov (%p28_p1, %s26_s18), 0  ;;  %p130_p3 = pnand %p601_p0, %p129_p2 }
   0x6   : > { %p149_p4 = scmp.lt.s32.totalorder (!%p130_p3), %s734_s15, 2  ;;  %p158_p5 = scmp.eq.s32.totalorder (!%p130_p3), %s734_s15, 0 }
   0x7   : > { %133 = sbr.rel (%p130_p3) target bundleno = 539 (0x21b), region = 28 }
   0xe   : > { %s792_s19 = scalar_select %p149_p4, %s734_s15, 2 }
   0xf   : > { %163 = sbr.rel (!%p158_p5) target bundleno = 34 (0x22), region = 32 }
  0x10   : > { %s622_s20 = sshll.u32 %s792_s19, 6  ;;  %s156_s23 = scalar_lea.vmem %s883_s3, %s792_s19 }
  0x11   : > { %s802_s26 = scalar_lea.vmem %s882_s2, %s622_s20 }
  0x16   : > { %v196_v0 = vld [vmem:[%s880_s0] sm:$0xff]  ;;  %v198_v1 = vld [vmem:[%s880_s0 + $0x8] sm:$0xff]  ;;  %v200_v2 = vld [vmem:[%s880_s0 + $0x10] sm:$0xff] }
  0x17   : > { %197 = vst [vmem:[#allocation2] sm:$0xff] %v196_v0  ;;  %199 = vst [vmem:[#allocation2 + $0x8] sm:$0xff] %v198_v1  ;;  %v202_v3 = vld [vmem:[%s880_s0 + $0x18] sm:$0xff] }
  0x18   : > { %201 = vst [vmem:[#allocation2 + $0x10] sm:$0xff] %v200_v2  ;;  %203 = vst [vmem:[#allocation2 + $0x18] sm:$0xff] %v202_v3 }
  0x19   : > { %211 = vsyncadd [#allocation5], 512 }
  0x1a   : > { %728 = dma.done.wait [#allocation5], 512 }
  0x1b   : > { %729 = vsyncadd [#allocation5], 4294966784 }
  0x1c   : > { %v248_v4 = vld [vmem:[%s881_s1] sm:$0xff]  ;;  %v250_v5 = vld [vmem:[%s881_s1 + $0x8] sm:$0xff]  ;;  %v252_v6 = vld [vmem:[%s881_s1 + $0x10] sm:$0xff] }
  0x1d   : > { %249 = vst [vmem:[#allocation4] sm:$0xff] %v248_v4  ;;  %251 = vst [vmem:[#allocation4 + $0x8] sm:$0xff] %v250_v5  ;;  %v254_v7 = vld [vmem:[%s881_s1 + $0x18] sm:$0xff] }
  0x1e   : > { %253 = vst [vmem:[#allocation4 + $0x10] sm:$0xff] %v252_v6  ;;  %255 = vst [vmem:[#allocation4 + $0x18] sm:$0xff] %v254_v7 }
  0x1f   : > { %263 = vsyncadd [#allocation7], 512 }
  0x20   : > { %730 = dma.done.wait [#allocation7], 512 }
  0x21   : > { %731 = vsyncadd [#allocation7], 4294966784 }
  0x22 PF: > { %v708_v8 = vld [vmem:[%s802_s26] sm:$0xff]   ;;  %v709_v9 = vld [vmem:[%s802_s26 + $0x8] sm:$0xff]   ;;  %v710_v10 = vld [vmem:[%s802_s26 + $0x10] sm:$0xff]   ;;  %vm427_vm0 = vcmask 523264   ;;  %p618_p6 = scmp.ge.s32.totalorder %s734_s15, 2 }
  0x23   : > { %644 = vmatprep.subr.bf16.mxu0 %v708_v8  ;;  %v711_v11 = vld [vmem:[%s802_s26 + $0x18] sm:$0xff]   ;;  %v271_v12 = vld [vmem:[#allocation2] sm:$0xff]  ;;  %v713_v14 = vld [vmem:[%s802_s26 + $0x28] sm:$0xff]  }
  0x24   : > { %645 = vmatpush3.bf16.msra.mxu0 %v708_v8  ;;  %660 = vmatprep.mubr.bf16.mxu0 %v271_v12  ;;  %v712_v13 = vld [vmem:[%s802_s26 + $0x20] sm:$0xff]   ;;  %v714_v15 = vld [vmem:[%s802_s26 + $0x30] sm:$0xff]   ;;  %v715_v16 = vld [vmem:[%s802_s26 + $0x38] sm:$0xff]  }
  0x25   : > { %646 = vmatprep.subr.bf16.mxu0 %v709_v9  ;;  %v272_v17 = vld [vmem:[#allocation2 + $0x8] sm:$0xff]  ;;  %v273_v18 = vld [vmem:[#allocation2 + $0x10] sm:$0xff]  ;;  %v274_v19 = vld [vmem:[#allocation2 + $0x18] sm:$0xff] }
  0x26   : > { %v412_v20 = vld [vmem:[#allocation4] sm:$0xff]  ;;  %v413_v33 = vld [vmem:[#allocation4 + $0x8] sm:$0xff]  ;;  %v414_v34 = vld [vmem:[#allocation4 + $0x10] sm:$0xff] }
  0x27   : > { %676 = vmatprep.mubr.msk.bf16.mxu1 %vm427_vm0, %v412_v20  ;;  %v415_v35 = vld [vmem:[#allocation4 + $0x18] sm:$0xff]  ;;  %v613_v36 = vld [vmem:[%s156_s23] ss:$0 sm:$0xff] }
  0x28   : > { %647 = vmatpush3.bf16.msra.mxu0 %v709_v9 }
  0x29   : > { %648 = vmatprep.subr.bf16.mxu0 %v710_v10 }
  0x2c   : > { %649 = vmatpush3.bf16.msra.mxu0 %v710_v10 }
  0x2d   : > { %650 = vmatprep.subr.bf16.mxu0 %v711_v11 }
  0x30   : > { %651 = vmatpush3.bf16.msra.mxu0 %v711_v11 }
  0x31   : > { %652 = vmatprep.subr.bf16.mxu0 %v712_v13 }
  0x34   : > { %653 = vmatpush3.bf16.msra.mxu0 %v712_v13 }
  0x35   : > { %654 = vmatprep.subr.bf16.mxu0 %v713_v14 }
  0x38   : > { %655 = vmatpush3.bf16.msra.mxu0 %v713_v14 }
  0x39   : > { %656 = vmatprep.subr.bf16.mxu0 %v714_v15 }
  0x3c   : > { %657 = vmatpush3.bf16.msra.mxu0 %v714_v15 }
  0x3d   : > { %658 = vmatprep.subr.bf16.mxu0 %v715_v16 }
  0x40   : > { %659 = vmatpush3.bf16.msra.mxu0 %v715_v16 }
  0x43   : > { %661 = vmatmul.mubr.bf16.vlgmr.msra.gmra.mrb[0].mxu0 %v272_v17 }
  0x44   : > { %664 = vmatprep.mubr.bf16.mxu0 %v273_v18 }
  0x4b   : > { %665 = vmatmul.mubr.bf16.gmra.mrb[4].mxu0 %v274_v19 }
 0x116   : > { %v662_v21 = vpop.f32.mrb[0].mxu0 }
 0x117   : > { %v373_v22 = vpop.f32.mrb[1].mxu0 }
 0x118   : > { %v663_v23 = vpop.f32.mrb[2].mxu0 }
 0x119   : > { %v405_v24 = vpack.c.bf16 %v663_v23, %v662_v21  ;;  %v376_v25 = vpop.f32.mrb[3].mxu0 }
 0x11a   : > { %v404_v26 = vpack.c.bf16 %v376_v25, %v373_v22 }
 0x11c   : > { %668 = vmatprep.subr.bf16.mxu1 %v404_v26 }
 0x11d   : > { %669 = vmatpush3.bf16.msra.mxu1 %v404_v26 }
 0x11e   : > { %v666_v27 = vpop.f32.mrb[4].mxu0  ;;  %670 = vmatprep.subr.bf16.mxu1 %v405_v24 }
 0x11f   : > { %v389_v28 = vpop.f32.mrb[5].mxu0 }
 0x120   : > { %v667_v29 = vpop.f32.mrb[6].mxu0 }
 0x121   : > { %v407_v30 = vpack.c.bf16 %v667_v29, %v666_v27  ;;  %v392_v31 = vpop.f32.mrb[7].mxu0  ;;  %671 = vmatpush3.bf16.msra.mxu1 %v405_v24 }
 0x122   : > { %v406_v32 = vpack.c.bf16 %v392_v31, %v389_v28 }
 0x124   : > { %672 = vmatprep.subr.bf16.mxu1 %v406_v32 }
 0x125   : > { %673 = vmatpush3.bf16.msra.mxu1 %v406_v32 }
 0x126   : > { %674 = vmatprep.subr.bf16.mxu1 %v407_v30 }
 0x129   : > { %675 = vmatpush3.bf16.msra.mxu1 %v407_v30 }
 0x12c   : > { %677 = vmatmul.mubr.msk.bf16.vlgmr.msra.gmra.mrb[0].mxu1 %vm427_vm0, %v413_v33 }
 0x12d   : > { %680 = vmatprep.mubr.msk.bf16.mxu1 %vm427_vm0, %v414_v34 }
 0x134   : > { %681 = vmatmul.mubr.msk.bf16.gmra.mrb[4].mxu1 %vm427_vm0, %v415_v35 }
 0x1ff   : > { %v678_v37 = vpop.f32.mrb[0].mxu1 }
 0x200   : > { %v483_v38 = vadd.f32 %v678_v37, %v613_v36  ;;  %v474_v39 = vpop.f32.mrb[1].mxu1 }
 0x201   : > { %v475_v40 = vadd.f32 %v613_v36, %v474_v39  ;;  %v679_v41 = vpop.f32.mrb[2].mxu1 }
 0x202   : > { %v486_v42 = vadd.f32 %v679_v41, %v613_v36  ;;  %v477_v43 = vpop.f32.mrb[3].mxu1  ;;  %v511_v55 = vmax.f32 (!%p618_p6), %v483_v38, 0.0 }
 0x203   : > { %v478_v44 = vadd.f32 %v613_v36, %v477_v43  ;;  %v509_v53 = vmax.f32 (!%p618_p6), %v475_v40, 0.0 }
 0x204   : > { %v512_v56 = vmax.f32 (!%p618_p6), %v486_v42, 0.0 }
 0x205   : > { %508 = sbr.rel (%p618_p6) target bundleno = 530 (0x212), region = 110  ;;  %v510_v54 = vmax.f32 (!%p618_p6), %v478_v44, 0.0 }
 0x206   : > { %v518_v62 = vpack.c.bf16 (!%p618_p6), %v512_v56, %v511_v55 }
 0x207   : > { %v682_v45 = vpop.f32.mrb[4].mxu1  ;;  %v517_v61 = vpack.c.bf16 (!%p618_p6), %v510_v54, %v509_v53 }
 0x208   : > { %v499_v46 = vadd.f32 %v682_v45, %v613_v36  ;;  %v490_v47 = vpop.f32.mrb[5].mxu1  ;;  %522 = vst [vmem:[#allocation2 + $0x8] sm:$0xff] (!%p618_p6), %v518_v62 }
 0x209   : > { %v491_v48 = vadd.f32 %v613_v36, %v490_v47  ;;  %v683_v49 = vpop.f32.mrb[6].mxu1  ;;  %521 = vst [vmem:[#allocation2] sm:$0xff] (!%p618_p6), %v517_v61 }
 0x20a   : > { %v502_v50 = vadd.f32 %v683_v49, %v613_v36  ;;  %v493_v51 = vpop.f32.mrb[7].mxu1  ;;  %v515_v59 = vmax.f32 (!%p618_p6), %v499_v46, 0.0 }
 0x20b   : > { %v494_v52 = vadd.f32 %v613_v36, %v493_v51  ;;  %v513_v57 = vmax.f32 (!%p618_p6), %v491_v48, 0.0 }
 0x20c   : > { %v516_v60 = vmax.f32 %v502_v50, 0.0 }
 0x20d   : > { %v514_v58 = vmax.f32 %v494_v52, 0.0 }
 0x20e   : > { %v520_v0 = vpack.c.bf16 %v516_v60, %v515_v59 }
 0x20f   : > { %v519_v63 = vpack.c.bf16 %v514_v58, %v513_v57 }
 0x210   : > { %524 = vst [vmem:[#allocation2 + $0x18] sm:$0xff] %v520_v0 }
 0x211   : > { %523 = vst [vmem:[#allocation2 + $0x10] sm:$0xff] %v519_v63 }
 0x212 PF: > { %p619_p7 = scmp.ne.s32.totalorder %s734_s15, 2 }
 0x213   : > { %529 = vst [vmem:[%s884_s4] sm:$0xff] (!%p619_p7), %v475_v40  ;;  %530 = vst [vmem:[%s884_s4 + $0x8] sm:$0xff] (!%p619_p7), %v478_v44 }
 0x214   : > { %528 = sbr.rel (%p619_p7) target bundleno = 539 (0x21b), region = 114  ;;  %531 = vst [vmem:[%s884_s4 + $0x10] sm:$0xff] (!%p619_p7), %v483_v38  ;;  %532 = vst [vmem:[%s884_s4 + $0x18] sm:$0xff] (!%p619_p7), %v486_v42 }
 0x215   : > { %533 = vst [vmem:[%s884_s4 + $0x20] sm:$0xff] (!%p619_p7), %v491_v48  ;;  %534 = vst [vmem:[%s884_s4 + $0x28] sm:$0xff] (!%p619_p7), %v494_v52 }
 0x216   : > { %535 = vst [vmem:[%s884_s4 + $0x30] sm:$0xff] (!%p619_p7), %v499_v46  ;;  %536 = vst [vmem:[%s884_s4 + $0x38] sm:$0xff] (!%p619_p7), %v502_v50 }
 0x21b PF: > { %s14_s17 = sadd.s32 1, %s742_s17   ;;  %s885_s15 = smov %s738_s16 }
 0x21c   : > { %p11_p8 = scmp.ge.s32.totalorder %s14_s17, 5   ;;  %s886_s16 = smov %s888_s18 }
 0x21e   :  { %13 = sbr.rel (!%p11_p8) target bundleno = 2 (0x2), region = 159 }

</bundles_post_ra>
